<compile_context>
chip_gen: v7x
topology: tpu7x:2x2x1
jax: 0.10.0
libtpu: 0.0.40
codegen_flags: <defaults>
</compile_context>

<pallas_src>
import functools

import jax
import jax.numpy as jnp
from jax.experimental import pallas as pl
from jax.experimental.pallas import tpu as pltpu

PARAMS = {'dec_layers': [200]}


def _round_up(n, m):
    return ((n + m - 1) // m) * m


def decoder_kernel(x_ref, w1_ref, b1_ref, w2_ref, b2_ref, o_ref):
    # Hidden layer: bf16 x @ bf16 w1, f32 accumulate on the MXU, bias + tanh in f32.
    h = jnp.dot(x_ref[...], w1_ref[...], preferred_element_type=jnp.float32)
    h = jnp.tanh(h + b1_ref[...]).astype(jnp.bfloat16)  # bf16 for 2nd MXU pass
    # Output layer: bf16 h @ bf16 w2, f32 accumulate, bias, store lane-dense f32.
    y = jnp.dot(h, w2_ref[...], preferred_element_type=jnp.float32)
    o_ref[...] = (y + b2_ref[...]).astype(o_ref.dtype)


def init_decoder_params(key, latent_dim, n_points):
    """Deterministic init mimicking torch.nn.Linear default (U[-1/sqrt(fan_in), 1/sqrt(fan_in)])."""
    dec_layers = PARAMS['dec_layers'].copy()
    dec_layers.insert(0, latent_dim)
    assert len(dec_layers) == 2  # single hidden layer per params['dec_layers'] = [200]
    d_in, d_hidden = dec_layers[0], dec_layers[1]
    d_out = n_points * 3

    k1, k2, k3, k4 = jax.random.split(key, 4)
    bound1 = 1.0 / (d_in ** 0.5)
    bound2 = 1.0 / (d_hidden ** 0.5)
    # Weights stored as (in_features, out_features) — i.e. W^T of torch's (out, in).
    w1 = jax.random.uniform(k1, (d_in, d_hidden), jnp.float32, -bound1, bound1)
    b1 = jax.random.uniform(k2, (1, d_hidden), jnp.float32, -bound1, bound1)
    w2 = jax.random.uniform(k3, (d_hidden, d_out), jnp.float32, -bound2, bound2)
    b2 = jax.random.uniform(k4, (1, d_out), jnp.float32, -bound2, bound2)
    return w1, b1, w2, b2


@functools.partial(jax.jit, static_argnames=("n_points", "tile_b"))
def decoder_forward(x, params, n_points, tile_b=128):
    """x: (batch, latent_dim) float32 -> (batch, n_points, 3) float32."""
    w1, b1, w2, b2 = params
    batch, k_dim = x.shape
    h_dim = w1.shape[1]
    d_out = w2.shape[1]
    assert d_out == n_points * 3

    # --- Pad to MXU / vreg friendly shapes (zeros => math unchanged) ------------
    k_pad = _round_up(k_dim, 128)          # contraction dim of matmul 1
    h_pad = _round_up(h_dim, 256)          # 256-wide MXU on v6e/v7x (also /128 for v5e)
    d_pad = _round_up(d_out, 128)          # lane-dense output => unmasked stores
    tile_b = min(tile_b, _round_up(batch, 8))
    b_pad = _round_up(batch, tile_b)

    x_p = jnp.pad(x.astype(jnp.bfloat16), ((0, b_pad - batch), (0, k_pad - k_dim)))
    w1_p = jnp.pad(w1.astype(jnp.bfloat16), ((0, k_pad - k_dim), (0, h_pad - h_dim)))
    b1_p = jnp.pad(b1, ((0, 0), (0, h_pad - h_dim)))          # f32; tanh(0)=0 on pad cols
    w2_p = jnp.pad(w2.astype(jnp.bfloat16), ((0, h_pad - h_dim), (0, d_pad - d_out)))
    b2_p = jnp.pad(b2, ((0, 0), (0, d_pad - d_out)))          # f32

    grid = (b_pad // tile_b,)

    cost = pl.CostEstimate(
        flops=2 * b_pad * (k_pad * h_pad + h_pad * d_pad),
        transcendentals=b_pad * h_pad,
        bytes_accessed=(x_p.size * 2 + w1_p.size * 2 + w2_p.size * 2
                        + b1_p.size * 4 + b2_p.size * 4 + b_pad * d_pad * 4),
    )

    y_pad = pl.pallas_call(
        decoder_kernel,
        out_shape=jax.ShapeDtypeStruct((b_pad, d_pad), jnp.float32),
        grid=grid,
        in_specs=[
            pl.BlockSpec((tile_b, k_pad), lambda i: (i, 0)),   # x: streams per batch tile
            pl.BlockSpec((k_pad, h_pad), lambda i: (0, 0)),    # w1: resident
            pl.BlockSpec((1, h_pad), lambda i: (0, 0)),        # b1: resident
            pl.BlockSpec((h_pad, d_pad), lambda i: (0, 0)),    # w2: resident
            pl.BlockSpec((1, d_pad), lambda i: (0, 0)),        # b2: resident
        ],
        out_specs=pl.BlockSpec((tile_b, d_pad), lambda i: (i, 0)),
        compiler_params=pltpu.CompilerParams(
            dimension_semantics=("parallel",),
        ),
        cost_estimate=cost,
    )(x_p, w1_p, b1_p, w2_p, b2_p)

    # Strip padding, then same as torch `x.reshape(-1, n_points, 3)`.
    y = y_pad[:batch, :d_out]
    return y.reshape(-1, n_points, 3)


def decoder_reference_f32(x, params, n_points):
    """Pure-JAX f32 reference (module semantics)."""
    w1, b1, w2, b2 = params
    h = jnp.tanh(x @ w1 + b1)
    y = h @ w2 + b2
    return y.reshape(-1, n_points, 3)


def decoder_reference_bf16(x, params, n_points):
    """Pure-JAX reference matching the kernel's bf16-input / f32-accumulate numerics."""
    w1, b1, w2, b2 = params
    h = jnp.dot(x.astype(jnp.bfloat16), w1.astype(jnp.bfloat16),
                preferred_element_type=jnp.float32) + b1
    h = jnp.tanh(h).astype(jnp.bfloat16)
    y = jnp.dot(h, w2.astype(jnp.bfloat16),
                preferred_element_type=jnp.float32) + b2
    return y.reshape(-1, n_points, 3)


if __name__ == "__main__":
    latent_dim = 30   # params['N_units']
    n_points = 16     # small synthetic point count
    batch = 8

    key = jax.random.PRNGKey(0)
    k_params, k_x = jax.random.split(key)
    params_d = init_decoder_params(k_params, latent_dim, n_points)
    x = jax.random.normal(k_x, (batch, latent_dim), dtype=jnp.float32)

    out = decoder_forward(x, params_d, n_points)
    out = jax.block_until_ready(out)
    assert out.shape == (batch, n_points, 3), out.shape

    # Strict check vs a reference that uses the same bf16-input / f32-accum numerics.
    ref_bf16 = decoder_reference_bf16(x, params_d, n_points)
    assert jnp.allclose(out, ref_bf16, atol=2e-3, rtol=2e-3), \
        f"mismatch vs bf16 reference: {jnp.max(jnp.abs(out - ref_bf16))}"

    # Loose check vs the exact f32 module semantics (bf16 weight/activation rounding).
    ref_f32 = decoder_reference_f32(x, params_d, n_points)
    assert jnp.allclose(out, ref_f32, atol=5e-2, rtol=5e-2), \
        f"mismatch vs f32 reference: {jnp.max(jnp.abs(out - ref_f32))}"

    print("KERNEL_OK")
</pallas_src>

<mosaic_0001>
module attributes {stable_mosaic.version = 11 : i64} {
  func.func @decoder_kernel(%arg0: i32, %arg1: memref<8x128xbf16, #tpu.memory_space<vmem>>, %arg2: memref<128x256xbf16, #tpu.memory_space<vmem>>, %arg3: memref<1x256xf32, #tpu.memory_space<vmem>>, %arg4: memref<256x128xbf16, #tpu.memory_space<vmem>>, %arg5: memref<1x128xf32, #tpu.memory_space<vmem>>, %arg6: memref<8x128xf32, #tpu.memory_space<vmem>>) attributes {dimension_semantics = [#tpu.dimension_semantics<parallel>], iteration_bounds = array<i64: 1>, scalar_prefetch = 0 : i64, scratch_operands = 0 : i64, tpu.core_type = #tpu.core_type<tc>, window_params = [{transform_indices = @transform_0, window_bounds = array<i64: 8, 128>}, {pipeline_mode = #tpu.pipeline_mode<synchronous>, transform_indices = @transform_1, window_bounds = array<i64: 128, 256>}, {pipeline_mode = #tpu.pipeline_mode<synchronous>, transform_indices = @transform_2, window_bounds = array<i64: 1, 256>}, {pipeline_mode = #tpu.pipeline_mode<synchronous>, transform_indices = @transform_3, window_bounds = array<i64: 256, 128>}, {pipeline_mode = #tpu.pipeline_mode<synchronous>, transform_indices = @transform_4, window_bounds = array<i64: 1, 128>}, {transform_indices = @transform_5, window_bounds = array<i64: 8, 128>}]} {
    %c0 = arith.constant 0 : index
    %c0_0 = arith.constant 0 : index
    %0 = vector.load %arg1[%c0, %c0_0] : memref<8x128xbf16, #tpu.memory_space<vmem>>, vector<8x128xbf16>
    %c0_1 = arith.constant 0 : index
    %c0_2 = arith.constant 0 : index
    %1 = vector.load %arg2[%c0_1, %c0_2] : memref<128x256xbf16, #tpu.memory_space<vmem>>, vector<128x256xbf16>
    %cst = arith.constant dense<0.000000e+00> : vector<8x256xf32>
    %2 = tpu.matmul %0, %1, %cst {dimension_numbers = #tpu.dot_dimension_numbers<[1], [0], [0], [1], [0, 0, 1, 1], [], []>} : vector<8x128xbf16>, vector<128x256xbf16>, vector<8x256xf32> -> vector<8x256xf32>
    %c0_3 = arith.constant 0 : index
    %c0_4 = arith.constant 0 : index
    %3 = vector.load %arg3[%c0_3, %c0_4] : memref<1x256xf32, #tpu.memory_space<vmem>>, vector<1x256xf32>
    %4 = vector.broadcast %3 : vector<1x256xf32> to vector<8x256xf32>
    %5 = arith.addf %2, %4 : vector<8x256xf32>
    %6 = math.tanh %5 : vector<8x256xf32>
    %7 = arith.truncf %6 : vector<8x256xf32> to vector<8x256xbf16>
    %c0_5 = arith.constant 0 : index
    %c0_6 = arith.constant 0 : index
    %8 = vector.load %arg4[%c0_5, %c0_6] : memref<256x128xbf16, #tpu.memory_space<vmem>>, vector<256x128xbf16>
    %cst_7 = arith.constant dense<0.000000e+00> : vector<8x128xf32>
    %9 = tpu.matmul %7, %8, %cst_7 {dimension_numbers = #tpu.dot_dimension_numbers<[1], [0], [0], [1], [0, 0, 1, 1], [], []>} : vector<8x256xbf16>, vector<256x128xbf16>, vector<8x128xf32> -> vector<8x128xf32>
    %c0_8 = arith.constant 0 : index
    %c0_9 = arith.constant 0 : index
    %10 = vector.load %arg5[%c0_8, %c0_9] : memref<1x128xf32, #tpu.memory_space<vmem>>, vector<1x128xf32>
    %11 = vector.broadcast %10 : vector<1x128xf32> to vector<8x128xf32>
    %12 = arith.addf %9, %11 : vector<8x128xf32>
    %c0_10 = arith.constant 0 : index
    %c0_11 = arith.constant 0 : index
    %13 = vector.load %arg6[%c0_10, %c0_11] : memref<8x128xf32, #tpu.memory_space<vmem>>, vector<8x128xf32>
    tpu.vector_store %arg6[%c0_10, %c0_11], %12 {strides = array<i32>} : memref<8x128xf32, #tpu.memory_space<vmem>>, vector<8x128xf32>,
    return
  }
  func.func @transform_0(%arg0: i32) -> (i32, i32) {
    %c0_i32 = arith.constant 0 : i32
    %c0_i32_0 = arith.constant 0 : i32
    return %arg0, %c0_i32 : i32, i32
  }
  func.func @transform_1(%arg0: i32) -> (i32, i32) {
    %c0_i32 = arith.constant 0 : i32
    %c0_i32_0 = arith.constant 0 : i32
    %c0_i32_1 = arith.constant 0 : i32
    return %c0_i32, %c0_i32_0 : i32, i32
  }
  func.func @transform_2(%arg0: i32) -> (i32, i32) {
    %c0_i32 = arith.constant 0 : i32
    %c0_i32_0 = arith.constant 0 : i32
    %c0_i32_1 = arith.constant 0 : i32
    return %c0_i32, %c0_i32_0 : i32, i32
  }
  func.func @transform_3(%arg0: i32) -> (i32, i32) {
    %c0_i32 = arith.constant 0 : i32
    %c0_i32_0 = arith.constant 0 : i32
    %c0_i32_1 = arith.constant 0 : i32
    return %c0_i32, %c0_i32_0 : i32, i32
  }
  func.func @transform_4(%arg0: i32) -> (i32, i32) {
    %c0_i32 = arith.constant 0 : i32
    %c0_i32_0 = arith.constant 0 : i32
    %c0_i32_1 = arith.constant 0 : i32
    return %c0_i32, %c0_i32_0 : i32, i32
  }
  func.func @transform_5(%arg0: i32) -> (i32, i32) {
    %c0_i32 = arith.constant 0 : i32
    %c0_i32_0 = arith.constant 0 : i32
    return %arg0, %c0_i32 : i32, i32
  }
}

</mosaic_0001>

<bundles_post_ra>
// kernel: decoder_forward.1
= control target key start
LH: loop header
LB: loop body
LE: loop exit
PB: predicated region body
PF: predicated region fallthrough
CT: control target
= control target key end

     0   :  { %v455_v1 = vmov 0   ;;  %v40_v34 = vlaneseq  ;;  %s594_s1 = inlined_call_operand.vmem [shape: bf16[128,256], index: 1, kind: input, shape index: {}]   ;;  %s595_s3 = inlined_call_operand.vmem [shape: bf16[256,128], index: 3, kind: input, shape index: {}]   ;;  %s596_s0 = inlined_call_operand.vmem [shape: bf16[8,128], index: 0, kind: input, shape index: {}]   ;;  %s597_s2 = inlined_call_operand.vmem [shape: f32[1,256], index: 2, kind: input, shape index: {}]   ;;  %s598_s4 = inlined_call_operand.vmem [shape: f32[1,128], index: 4, kind: input, shape index: {}]   ;;  %s599_s5 = inlined_call_operand.vmem [shape: f32[8,128], index: 5, kind: output, shape index: {}]  }
   0x1   :  { %v411_v0 = vld [vmem:[%s594_s1 + $0x4] ss:$8 sps:$4 sm:$0xff]   ;;  %162 = vmatprep.mubr.bf16.mxu0 %v455_v1  ;;  %v413_v2 = vld [vmem:[%s594_s1] ss:$8 sps:$4 sm:$0xff]   ;;  %v414_v3 = vld [vmem:[%s594_s1 + $0x14] ss:$8 sps:$4 sm:$0xff]  }
   0x2   :  { %130 = vmatprep.subr.bf16.mxu0 %v411_v0  ;;  %v416_v4 = vld [vmem:[%s594_s1 + $0x10] ss:$8 sps:$4 sm:$0xff]   ;;  %v417_v5 = vld [vmem:[%s594_s1 + $0x24] ss:$8 sps:$4 sm:$0xff]   ;;  %v419_v6 = vld [vmem:[%s594_s1 + $0x20] ss:$8 sps:$4 sm:$0xff]  }
   0x3   :  { %131 = vmatpush1.bf16.msra.mxu0 %v413_v2  ;;  %v420_v7 = vld [vmem:[%s594_s1 + $0x34] ss:$8 sps:$4 sm:$0xff]   ;;  %v422_v8 = vld [vmem:[%s594_s1 + $0x30] ss:$8 sps:$4 sm:$0xff]   ;;  %v423_v9 = vld [vmem:[%s594_s1 + $0x44] ss:$8 sps:$4 sm:$0xff]  }
   0x4   :  { %132 = vmatprep.subr.bf16.mxu0 %v414_v3  ;;  %v435_v10 = vld [vmem:[%s595_s3 + $0x40] sm:$0xff]   ;;  %v437_v13 = vld [vmem:[%s595_s3 + $0x48] sm:$0xff]   ;;  %v439_v15 = vld [vmem:[%s595_s3 + $0x50] sm:$0xff]   ;;  %v41_v35 = vshrl.u32 %v40_v34, 7 }
   0x5   :  { %v436_v11 = vld [vmem:[%s595_s3] sm:$0xff]   ;;  %388 = vmatprep.subr.bf16.mxu1 %v435_v10  ;;  %v438_v14 = vld [vmem:[%s595_s3 + $0x8] sm:$0xff]   ;;  %v426_v16 = vld [vmem:[%s594_s1 + $0x54] ss:$8 sps:$4 sm:$0xff]  }
   0x6   :  { %v425_v12 = vld [vmem:[%s594_s1 + $0x40] ss:$8 sps:$4 sm:$0xff]   ;;  %389 = vmatpush3.bf16.msra.mxu1 %v436_v11  ;;  %v428_v17 = vld [vmem:[%s594_s1 + $0x50] ss:$8 sps:$4 sm:$0xff]   ;;  %v429_v18 = vld [vmem:[%s594_s1 + $0x64] ss:$8 sps:$4 sm:$0xff]  }
   0x7   :  { %133 = vmatpush1.bf16.msra.mxu0 %v416_v4  ;;  %390 = vmatprep.subr.bf16.mxu1 %v437_v13  ;;  %v440_v19 = vld [vmem:[%s595_s3 + $0x10] sm:$0xff]   ;;  %v441_v20 = vld [vmem:[%s595_s3 + $0x58] sm:$0xff]   ;;  %v431_v22 = vld [vmem:[%s594_s1 + $0x60] ss:$8 sps:$4 sm:$0xff]   ;;  %v42_v36 = vsub.s32 0, %v41_v35  ;;  %v46_v38 = vsub.s32 1, %v41_v35 }
   0x8   :  { %134 = vmatprep.subr.bf16.mxu0 %v417_v5  ;;  %v442_v21 = vld [vmem:[%s595_s3 + $0x18] sm:$0xff]   ;;  %v21_v25 = vld [vmem:[%s596_s0] sm:$0xf]  ;;  %v445_v28 = vld [vmem:[%s595_s3 + $0x68] sm:$0xff]  }
   0x9   :  { %v432_v23 = vld [vmem:[%s594_s1 + $0x74] ss:$8 sps:$4 sm:$0xff]   ;;  %v434_v24 = vld [vmem:[%s594_s1 + $0x70] ss:$8 sps:$4 sm:$0xff]   ;;  %v443_v26 = vld [vmem:[%s595_s3 + $0x60] sm:$0xff]  }
   0xa   :  { %391 = vmatpush3.bf16.msra.mxu1 %v438_v14  ;;  %v444_v27 = vld [vmem:[%s595_s3 + $0x20] sm:$0xff]   ;;  %v446_v29 = vld [vmem:[%s595_s3 + $0x28] sm:$0xff]   ;;  %v447_v30 = vld [vmem:[%s595_s3 + $0x70] sm:$0xff]  }
   0xb   :  { %135 = vmatpush1.bf16.msra.mxu0 %v419_v6  ;;  %392 = vmatprep.subr.bf16.mxu1 %v439_v15  ;;  %v448_v31 = vld [vmem:[%s595_s3 + $0x30] sm:$0xff]   ;;  %v449_v32 = vld [vmem:[%s595_s3 + $0x78] sm:$0xff]   ;;  %v38_v37 = vld [vmem:[%s597_s2] sm:$0x3] }
   0xc   :  { %136 = vmatprep.subr.bf16.mxu0 %v420_v7  ;;  %v450_v33 = vld [vmem:[%s595_s3 + $0x38] sm:$0xff]   ;;  %v43_v39 = vrot.slane %v38_v37, %v42_v36  ;;  %v47_v40 = vrot.slane %v38_v37, %v46_v38  ;;  %v371_v52 = vld [vmem:[%s598_s4] ss:$0 sm:$0xff] }
   0xe   :  { %393 = vmatpush3.bf16.msra.mxu1 %v440_v19 }
   0xf   :  { %137 = vmatpush1.bf16.msra.mxu0 %v422_v8  ;;  %394 = vmatprep.subr.bf16.mxu1 %v441_v20 }
  0x10   :  { %138 = vmatprep.subr.bf16.mxu0 %v423_v9 }
  0x12   :  { %395 = vmatpush3.bf16.msra.mxu1 %v442_v21 }
  0x13   :  { %139 = vmatpush1.bf16.msra.mxu0 %v425_v12  ;;  %396 = vmatprep.subr.bf16.mxu1 %v443_v26 }
  0x14   :  { %140 = vmatprep.subr.bf16.mxu0 %v426_v16 }
  0x16   :  { %397 = vmatpush3.bf16.msra.mxu1 %v444_v27 }
  0x17   :  { %141 = vmatpush1.bf16.msra.mxu0 %v428_v17  ;;  %398 = vmatprep.subr.bf16.mxu1 %v445_v28 }
  0x18   :  { %142 = vmatprep.subr.bf16.mxu0 %v429_v18 }
  0x1a   :  { %399 = vmatpush3.bf16.msra.mxu1 %v446_v29 }
  0x1b   :  { %143 = vmatpush1.bf16.msra.mxu0 %v431_v22  ;;  %400 = vmatprep.subr.bf16.mxu1 %v447_v30 }
  0x1c   :  { %144 = vmatprep.subr.bf16.mxu0 %v432_v23 }
  0x1e   :  { %401 = vmatpush3.bf16.msra.mxu1 %v448_v31 }
  0x1f   :  { %145 = vmatpush1.bf16.msra.mxu0 %v434_v24  ;;  %402 = vmatprep.subr.bf16.mxu1 %v449_v32 }
  0x22   :  { %163 = vmatmul.mubr.bf16.vlgmr.msra.gmra.mrb[0].mxu0 %v21_v25  ;;  %403 = vmatpush3.bf16.msra.mxu1 %v450_v33 }
  0xf5   :  { %v164_v41 = vpop.f32.mrb[0].mxu0 }
  0xf6   :  { %v165_v42 = vadd.f32 %v164_v41, %v43_v39  ;;  %v166_v43 = vpop.f32.mrb[1].mxu0 }
  0xf7   :  { %v167_v44 = vadd.f32 %v166_v43, %v47_v40  ;;  %v168_v45 = vpop.f32.mrb[2].mxu0 }
  0xf8   :  { %451 = vtanh.f32 %v165_v42  ;;  %v169_v46 = vpop.f32.mrb[3].mxu0 }
  0xf9   :  { %453 = vtanh.f32 %v167_v44 }
 0x102   :  { %v452_v47 = vpop.eup %451 }
 0x103   :  { %v454_v48 = vpop.eup %453  ;;  %v173_v50 = vpack.c.bf16 %v452_v47, %v452_v47 }
 0x104   :  { %v174_v49 = vpack.c.bf16 %v454_v48, %v454_v48 }
 0x106   :  { %342 = vmatprep.mubr.bf16.mxu1 %v174_v49 }
 0x107   :  { %343 = vmatmul.mubr.bf16.vlgmr.msra.gmra.mrb[0].mxu1 %v173_v50 }
 0x1da   :  { %v404_v51 = vpop.f32.mrb[0].mxu1 }
 0x1db   :  { %v405_v53 = vpop.f32.mrb[1].mxu1 }
 0x1dc   :  { %v406_v54 = vadd.f32 %v405_v53, %v404_v51  ;;  %v407_v55 = vpop.f32.mrb[2].mxu1 }
 0x1dd   :  { %v408_v56 = vpop.f32.mrb[3].mxu1 }
 0x1de   :  { %v345_v57 = vadd.f32 %v406_v54, %v371_v52 }
 0x1e0   :  { %350 = vst [vmem:[%s599_s5] sm:$0xff] %v345_v57 }

</bundles_post_ra>
